<compile_context>
chip_gen: v6e
topology: v6e:2x2x1
jax: 0.10.0
libtpu: 0.0.40
codegen_flags: <defaults>
</compile_context>

<pallas_src>
import functools

import jax
import jax.numpy as jnp
from jax import lax
from jax.experimental import pallas as pl
from jax.experimental.pallas import tpu as pltpu


NEG_INF = -1e30
LEAKY_SLOPE = 0.01  # F.leaky_relu default negative_slope


def _gat_all_heads_kernel(h_ref, hdst_ref, w_ref, u_ref, adj_ref, out_ref, *,
                          mxu_dtype):
    # h_ref:    (N, in_dim)            all nodes (source side), resident across grid
    # hdst_ref: (TJ, in_dim)           this dst tile's node features
    # w_ref:    (H, in_dim, out_dim)   fc weights, all heads
    # u_ref:    (H, 2, in_dim)         folded attn weights: u[h,0]=W[h]@a_src, u[h,1]=W[h]@a_dst
    # adj_ref:  (N, TJ) int8           adj[i, c] = 1  iff edge  i -> (tile_start + c)
    # out_ref:  (TJ, H*out_dim)        concatenated head outputs for this dst tile
    f32 = jnp.float32
    num_heads = w_ref.shape[0]

    h = h_ref[...].astype(f32)                       # (N, in_dim)
    h_dst = hdst_ref[...].astype(f32)                # (TJ, in_dim)
    h_mm = h.astype(mxu_dtype)                       # matmul-precision copy (hoisted)

    # Single hoisted mask (int8 -> f32 convert once; one select per head below).
    edge_mask = adj_ref[...].astype(f32) > 0.0       # (N, TJ) bool

    head_outs = []
    for hd in range(num_heads):                      # static unroll, H is small
        w = w_ref[hd].astype(mxu_dtype)              # (in_dim, out_dim)
        u_h = u_ref[hd]                              # (2, in_dim)
        u_src = u_h[0:1, :].astype(f32)              # (1, in_dim)
        u_dst = u_h[1:2, :].astype(f32)              # (1, in_dim)

        # Projection for all source nodes (MXU).
        z = jnp.dot(h_mm, w, preferred_element_type=f32)          # (N, out_dim)

        # Per-node attention logits via MXU (no cross-lane reductions):
        #   s_i = a_src . z_i = h_i . (W a_src),   d_j = a_dst . z_j
        s = lax.dot_general(h, u_src, (((1,), (1,)), ((), ())),
                            preferred_element_type=f32)           # (N, 1)
        d = lax.dot_general(u_dst, h_dst, (((1,), (1,)), ((), ())),
                            preferred_element_type=f32)           # (1, TJ)

        e = s + d                                                  # (N, TJ)
        e = jnp.where(e > 0, e, LEAKY_SLOPE * e)                   # LeakyReLU
        e = jnp.where(edge_mask, e, NEG_INF)                       # single additive-style mask

        # Masked softmax over source axis (axis 0); masked entries underflow to 0.
        m = jnp.max(e, axis=0, keepdims=True)                      # (1, TJ)
        p = jnp.exp(e - m)                                         # (N, TJ), f32
        denom = jnp.sum(p, axis=0, keepdims=True)                  # (1, TJ)
        inv = pl.reciprocal(jnp.maximum(denom, 1e-20), approx=False)

        # Unnormalized aggregation straight on the MXU (contract source axis),
        # then a cheap (TJ, out_dim) row scaling -- no alpha transpose, no N^2
        # normalization multiplies.
        out_un = lax.dot_general(p.astype(mxu_dtype), z.astype(mxu_dtype),
                                 (((0,), (0,)), ((), ())),
                                 preferred_element_type=f32)       # (TJ, out_dim)
        head_outs.append(out_un * jnp.transpose(inv))              # (TJ, out_dim)

    out_ref[...] = jnp.concatenate(head_outs, axis=-1).astype(out_ref.dtype)


def multihead_gat(h, W, a, adj, merge="cat", *, tile_dst=None,
                  mxu_dtype=jnp.float32):
    """h: (N, in_dim), W: (H, in_dim, out_dim), a: (H, 2, out_dim), adj: (N, N)."""
    num_heads, in_dim, out_dim = W.shape
    N = h.shape[0]

    # Fold attention vectors into input space: u[h,0] = W[h] @ a_src, u[h,1] = W[h] @ a_dst.
    u = jnp.einsum("hio,hso->hsi", W.astype(jnp.float32), a.astype(jnp.float32),
                   precision=lax.Precision.HIGHEST)                # (H, 2, in_dim)

    # int8 adjacency: 4x less HBM traffic / VMEM than f32.
    adj_i8 = (adj > 0).astype(jnp.int8)

    # Destination-tile size. When tiling (tile < N) the adjacency tile's lane
    # dim must be a multiple of 128; 256 also keeps v7x's 64 MiB VMEM happy.
    if tile_dst is None:
        tile_dst = N if N <= 256 else 256
    if tile_dst < N:
        tile_dst = max(128, (tile_dst // 128) * 128)
    tile_dst = min(tile_dst, N)
    num_tiles = pl.cdiv(N, tile_dst)

    # Explicit VMEM budget (double-buffered blocks + in-kernel intermediates),
    # clamped to what every generation (incl. v7x 64 MiB) can provide.
    blk_bytes = (N * in_dim * 4                      # h (full, resident)
                 + tile_dst * in_dim * 4             # h dst tile
                 + num_heads * in_dim * out_dim * 4  # W
                 + num_heads * 2 * in_dim * 4        # u
                 + N * tile_dst * 1                  # int8 adjacency tile
                 + tile_dst * num_heads * out_dim * 4)
    interm = 6 * N * tile_dst * 4 + 2 * N * out_dim * 4
    vmem_limit = int(min(max(2 * blk_bytes + interm, 32 * 1024 * 1024),
                         64 * 1024 * 1024))

    kernel = functools.partial(_gat_all_heads_kernel, mxu_dtype=mxu_dtype)

    out = pl.pallas_call(
        kernel,
        out_shape=jax.ShapeDtypeStruct((N, num_heads * out_dim), h.dtype),
        grid_spec=pltpu.PrefetchScalarGridSpec(
            num_scalar_prefetch=0,
            grid=(num_tiles,),
            in_specs=[
                pl.BlockSpec((N, in_dim), lambda j: (0, 0)),            # h (all sources)
                pl.BlockSpec((tile_dst, in_dim), lambda j: (j, 0)),     # h (dst tile)
                pl.BlockSpec((num_heads, in_dim, out_dim), lambda j: (0, 0, 0)),
                pl.BlockSpec((num_heads, 2, in_dim), lambda j: (0, 0, 0)),
                pl.BlockSpec((N, tile_dst), lambda j: (0, j)),          # adjacency tile
            ],
            out_specs=pl.BlockSpec((tile_dst, num_heads * out_dim), lambda j: (j, 0)),
        ),
        compiler_params=pltpu.CompilerParams(
            dimension_semantics=("parallel",),
            vmem_limit_bytes=vmem_limit,
        ),
    )(h, h, W, u, adj_i8)

    if merge == "cat":
        return out
    # torch.mean(torch.stack(head_outs)) is a scalar mean over every element;
    # the concatenated matrix contains exactly those elements.
    return jnp.mean(out)


def multihead_gat_ref(h, W, a, adj, merge="cat"):
    """Pure-JAX reference mirroring the DGL GATLayer math."""
    outs = []
    for hd in range(W.shape[0]):
        z = h @ W[hd]
        s = z @ a[hd, 0]
        d = z @ a[hd, 1]
        e = s[:, None] + d[None, :]
        e = jnp.where(e > 0, e, LEAKY_SLOPE * e)
        mask = adj > 0
        e = jnp.where(mask, e, NEG_INF)
        e = e - jnp.max(e, axis=0, keepdims=True)
        p = jnp.where(mask, jnp.exp(e), 0.0)
        alpha = p / jnp.maximum(jnp.sum(p, axis=0, keepdims=True), 1e-20)
        outs.append(alpha.T @ z)
    if merge == "cat":
        return jnp.concatenate(outs, axis=1)
    return jnp.mean(jnp.stack(outs))


def _ring_graph(n):
    """Deterministic graph: self-loops + bidirectional ring (every node has in-edges)."""
    adj = jnp.eye(n, dtype=jnp.float32)
    idx = jnp.arange(n)
    adj = adj.at[idx, (idx + 1) % n].set(1.0)
    adj = adj.at[(idx + 1) % n, idx].set(1.0)
    return adj


if __name__ == "__main__":
    # Small deterministic problem: 16 nodes, in_dim=16, out_dim=8, 4 heads.
    N, in_dim, out_dim, num_heads = 16, 16, 8, 4

    key = jax.random.PRNGKey(0)
    k_h, k_w, k_a = jax.random.split(key, 3)
    h = jax.random.normal(k_h, (N, in_dim), dtype=jnp.float32)
    W = 0.1 * jax.random.normal(k_w, (num_heads, in_dim, out_dim), dtype=jnp.float32)
    a = 0.1 * jax.random.normal(k_a, (num_heads, 2, out_dim), dtype=jnp.float32)
    adj = _ring_graph(N)

    ref = multihead_gat_ref(h, W, a, adj, merge="cat")

    # f32 path (strict tolerance).
    out = jax.block_until_ready(multihead_gat(h, W, a, adj, merge="cat"))
    assert out.shape == (N, num_heads * out_dim), out.shape
    assert jnp.allclose(out, ref, atol=5e-5, rtol=5e-5), float(
        jnp.max(jnp.abs(out - ref)))

    # bf16 MXU path (v6e/v7x): matmuls in bf16, softmax stays f32.
    out_bf16 = jax.block_until_ready(
        multihead_gat(h, W, a, adj, merge="cat", mxu_dtype=jnp.bfloat16))
    assert jnp.allclose(out_bf16, ref, atol=3e-2, rtol=3e-2), float(
        jnp.max(jnp.abs(out_bf16 - ref)))

    # merge='mean' path (tutorial quirk: scalar mean over everything).
    m = jax.block_until_ready(multihead_gat(h, W, a, adj, merge="mean"))
    mref = multihead_gat_ref(h, W, a, adj, merge="mean")
    assert jnp.allclose(m, mref, atol=5e-5, rtol=5e-5)

    # Multi-tile check: 256 nodes, dst tile 128 -> grid of 2 tiles.
    N2, in2, out2, H2 = 256, 32, 16, 4
    k2h, k2w, k2a = jax.random.split(jax.random.PRNGKey(1), 3)
    h2 = jax.random.normal(k2h, (N2, in2), dtype=jnp.float32)
    W2 = 0.1 * jax.random.normal(k2w, (H2, in2, out2), dtype=jnp.float32)
    a2 = 0.1 * jax.random.normal(k2a, (H2, 2, out2), dtype=jnp.float32)
    adj2 = _ring_graph(N2)
    idx2 = jnp.arange(N2)
    adj2 = adj2.at[idx2, (idx2 * 7) % N2].set(1.0)

    out2_ = jax.block_until_ready(
        multihead_gat(h2, W2, a2, adj2, merge="cat", tile_dst=128))
    ref2 = multihead_gat_ref(h2, W2, a2, adj2, merge="cat")
    assert out2_.shape == (N2, H2 * out2), out2_.shape
    assert jnp.allclose(out2_, ref2, atol=5e-5, rtol=5e-5), float(
        jnp.max(jnp.abs(out2_ - ref2)))

    print("KERNEL_OK")
</pallas_src>

<mosaic_0001>
module attributes {stable_mosaic.version = 11 : i64} {
  func.func @_gat_all_heads_kernel(%arg0: i32, %arg1: memref<16x16xf32, #tpu.memory_space<vmem>>, %arg2: memref<16x16xf32, #tpu.memory_space<vmem>>, %arg3: memref<4x16x8xf32, #tpu.memory_space<vmem>>, %arg4: memref<4x2x16xf32, #tpu.memory_space<vmem>>, %arg5: memref<16x16xi8, #tpu.memory_space<vmem>>, %arg6: memref<16x32xf32, #tpu.memory_space<vmem>>) attributes {dimension_semantics = [#tpu.dimension_semantics<parallel>], iteration_bounds = array<i64: 1>, scalar_prefetch = 0 : i64, scratch_operands = 0 : i64, tpu.core_type = #tpu.core_type<tc>, window_params = [{pipeline_mode = #tpu.pipeline_mode<synchronous>, transform_indices = @transform_0, window_bounds = array<i64: 16, 16>}, {transform_indices = @transform_1, window_bounds = array<i64: 16, 16>}, {pipeline_mode = #tpu.pipeline_mode<synchronous>, transform_indices = @transform_2, window_bounds = array<i64: 4, 16, 8>}, {pipeline_mode = #tpu.pipeline_mode<synchronous>, transform_indices = @transform_3, window_bounds = array<i64: 4, 2, 16>}, {transform_indices = @transform_4, window_bounds = array<i64: 16, 16>}, {transform_indices = @transform_5, window_bounds = array<i64: 16, 32>}]} {
    %c0 = arith.constant 0 : index
    %c0_0 = arith.constant 0 : index
    %0 = vector.load %arg1[%c0, %c0_0] : memref<16x16xf32, #tpu.memory_space<vmem>>, vector<16x16xf32>
    %c0_1 = arith.constant 0 : index
    %c0_2 = arith.constant 0 : index
    %1 = vector.load %arg2[%c0_1, %c0_2] : memref<16x16xf32, #tpu.memory_space<vmem>>, vector<16x16xf32>
    %c0_3 = arith.constant 0 : index
    %c0_4 = arith.constant 0 : index
    %2 = vector.load %arg5[%c0_3, %c0_4] : memref<16x16xi8, #tpu.memory_space<vmem>>, vector<16x16xi8>
    %3 = arith.sitofp %2 : vector<16x16xi8> to vector<16x16xf32>
    %cst = arith.constant 0.000000e+00 : f32
    %4 = vector.broadcast %cst : f32 to vector<16x16xf32>
    %5 = arith.cmpf ogt, %3, %4 : vector<16x16xf32>
    %c0_5 = arith.constant 0 : index
    %c0_6 = arith.constant 0 : index
    %c0_7 = arith.constant 0 : index
    %6 = vector.load %arg3[%c0_5, %c0_6, %c0_7] : memref<4x16x8xf32, #tpu.memory_space<vmem>>, vector<1x16x8xf32>
    %7 = vector.shape_cast %6 : vector<1x16x8xf32> to vector<16x8xf32>
    %c0_8 = arith.constant 0 : index
    %c0_9 = arith.constant 0 : index
    %c0_10 = arith.constant 0 : index
    %8 = vector.load %arg4[%c0_8, %c0_9, %c0_10] : memref<4x2x16xf32, #tpu.memory_space<vmem>>, vector<1x2x16xf32>
    %9 = vector.shape_cast %8 : vector<1x2x16xf32> to vector<2x16xf32>
    %10 = vector.extract_strided_slice %9 {offsets = [0, 0], sizes = [1, 16], strides = [1, 1]} : vector<2x16xf32> to vector<1x16xf32>
    %11 = vector.extract_strided_slice %9 {offsets = [1, 0], sizes = [1, 16], strides = [1, 1]} : vector<2x16xf32> to vector<1x16xf32>
    %cst_11 = arith.constant dense<0.000000e+00> : vector<16x8xf32>
    %12 = tpu.matmul %0, %7, %cst_11 {dimension_numbers = #tpu.dot_dimension_numbers<[1], [0], [0], [1], [0, 0, 1, 1], [], []>} : vector<16x16xf32>, vector<16x8xf32>, vector<16x8xf32> -> vector<16x8xf32>
    %cst_12 = arith.constant dense<0.000000e+00> : vector<16x1xf32>
    %13 = tpu.matmul %0, %10, %cst_12 {dimension_numbers = #tpu.dot_dimension_numbers<[1], [1], [0], [0], [0, 0, 1, 0], [], []>} : vector<16x16xf32>, vector<1x16xf32>, vector<16x1xf32> -> vector<16x1xf32>
    %cst_13 = arith.constant dense<0.000000e+00> : vector<1x16xf32>
    %14 = tpu.matmul %11, %1, %cst_13 {dimension_numbers = #tpu.dot_dimension_numbers<[1], [1], [0], [0], [0, 0, 1, 0], [], []>} : vector<1x16xf32>, vector<16x16xf32>, vector<1x16xf32> -> vector<1x16xf32>
    %15 = vector.broadcast %13 : vector<16x1xf32> to vector<16x16xf32>
    %16 = vector.broadcast %14 : vector<1x16xf32> to vector<16x16xf32>
    %17 = arith.addf %15, %16 : vector<16x16xf32>
    %cst_14 = arith.constant 0.000000e+00 : f32
    %18 = vector.broadcast %cst_14 : f32 to vector<16x16xf32>
    %19 = arith.cmpf ogt, %17, %18 : vector<16x16xf32>
    %cst_15 = arith.constant 0.00999999977 : f32
    %20 = vector.broadcast %cst_15 : f32 to vector<16x16xf32>
    %21 = arith.mulf %20, %17 : vector<16x16xf32>
    %22 = arith.select %19, %17, %21 : vector<16x16xi1>, vector<16x16xf32>
    %cst_16 = arith.constant -1.000000e+30 : f32
    %23 = vector.broadcast %cst_16 : f32 to vector<16x16xf32>
    %24 = arith.select %5, %22, %23 : vector<16x16xi1>, vector<16x16xf32>
    %cst_17 = arith.constant dense<0xFF800000> : vector<16xf32>
    %25 = vector.multi_reduction <maximumf>, %24, %cst_17 [0] : vector<16x16xf32> to vector<16xf32>
    %26 = vector.shape_cast %25 : vector<16xf32> to vector<1x16xf32>
    %27 = vector.broadcast %26 : vector<1x16xf32> to vector<16x16xf32>
    %28 = arith.subf %24, %27 : vector<16x16xf32>
    %29 = math.exp %28 : vector<16x16xf32>
    %cst_18 = arith.constant dense<0.000000e+00> : vector<16xf32>
    %30 = vector.multi_reduction <add>, %29, %cst_18 [0] : vector<16x16xf32> to vector<16xf32>
    %31 = vector.shape_cast %30 : vector<16xf32> to vector<1x16xf32>
    %cst_19 = arith.constant 9.99999968E-21 : f32
    %32 = vector.broadcast %cst_19 : f32 to vector<1x16xf32>
    %33 = arith.maximumf %31, %32 : vector<1x16xf32>
    %34 = tpu.reciprocal %33 : vector<1x16xf32> -> vector<1x16xf32>
    %cst_20 = arith.constant dense<0.000000e+00> : vector<16x8xf32>
    %35 = tpu.matmul %29, %12, %cst_20 {dimension_numbers = #tpu.dot_dimension_numbers<[0], [0], [1], [1], [0, 1, 1, 1], [], []>} : vector<16x16xf32>, vector<16x8xf32>, vector<16x8xf32> -> vector<16x8xf32>
    %36 = tpu.transpose %34, [1, 0] : vector<1x16xf32> -> vector<16x1xf32>
    %37 = vector.broadcast %36 : vector<16x1xf32> to vector<16x8xf32>
    %38 = arith.mulf %35, %37 : vector<16x8xf32>
    %c1 = arith.constant 1 : index
    %c0_21 = arith.constant 0 : index
    %c0_22 = arith.constant 0 : index
    %39 = vector.load %arg3[%c1, %c0_21, %c0_22] : memref<4x16x8xf32, #tpu.memory_space<vmem>>, vector<1x16x8xf32>
    %40 = vector.shape_cast %39 : vector<1x16x8xf32> to vector<16x8xf32>
    %c1_23 = arith.constant 1 : index
    %c0_24 = arith.constant 0 : index
    %c0_25 = arith.constant 0 : index
    %41 = vector.load %arg4[%c1_23, %c0_24, %c0_25] : memref<4x2x16xf32, #tpu.memory_space<vmem>>, vector<1x2x16xf32>
    %42 = vector.shape_cast %41 : vector<1x2x16xf32> to vector<2x16xf32>
    %43 = vector.extract_strided_slice %42 {offsets = [0, 0], sizes = [1, 16], strides = [1, 1]} : vector<2x16xf32> to vector<1x16xf32>
    %44 = vector.extract_strided_slice %42 {offsets = [1, 0], sizes = [1, 16], strides = [1, 1]} : vector<2x16xf32> to vector<1x16xf32>
    %cst_26 = arith.constant dense<0.000000e+00> : vector<16x8xf32>
    %45 = tpu.matmul %0, %40, %cst_26 {dimension_numbers = #tpu.dot_dimension_numbers<[1], [0], [0], [1], [0, 0, 1, 1], [], []>} : vector<16x16xf32>, vector<16x8xf32>, vector<16x8xf32> -> vector<16x8xf32>
    %cst_27 = arith.constant dense<0.000000e+00> : vector<16x1xf32>
    %46 = tpu.matmul %0, %43, %cst_27 {dimension_numbers = #tpu.dot_dimension_numbers<[1], [1], [0], [0], [0, 0, 1, 0], [], []>} : vector<16x16xf32>, vector<1x16xf32>, vector<16x1xf32> -> vector<16x1xf32>
    %cst_28 = arith.constant dense<0.000000e+00> : vector<1x16xf32>
    %47 = tpu.matmul %44, %1, %cst_28 {dimension_numbers = #tpu.dot_dimension_numbers<[1], [1], [0], [0], [0, 0, 1, 0], [], []>} : vector<1x16xf32>, vector<16x16xf32>, vector<1x16xf32> -> vector<1x16xf32>
    %48 = vector.broadcast %46 : vector<16x1xf32> to vector<16x16xf32>
    %49 = vector.broadcast %47 : vector<1x16xf32> to vector<16x16xf32>
    %50 = arith.addf %48, %49 : vector<16x16xf32>
    %cst_29 = arith.constant 0.000000e+00 : f32
    %51 = vector.broadcast %cst_29 : f32 to vector<16x16xf32>
    %52 = arith.cmpf ogt, %50, %51 : vector<16x16xf32>
    %cst_30 = arith.constant 0.00999999977 : f32
    %53 = vector.broadcast %cst_30 : f32 to vector<16x16xf32>
    %54 = arith.mulf %53, %50 : vector<16x16xf32>
    %55 = arith.select %52, %50, %54 : vector<16x16xi1>, vector<16x16xf32>
    %cst_31 = arith.constant -1.000000e+30 : f32
    %56 = vector.broadcast %cst_31 : f32 to vector<16x16xf32>
    %57 = arith.select %5, %55, %56 : vector<16x16xi1>, vector<16x16xf32>
    %cst_32 = arith.constant dense<0xFF800000> : vector<16xf32>
    %58 = vector.multi_reduction <maximumf>, %57, %cst_32 [0] : vector<16x16xf32> to vector<16xf32>
    %59 = vector.shape_cast %58 : vector<16xf32> to vector<1x16xf32>
    %60 = vector.broadcast %59 : vector<1x16xf32> to vector<16x16xf32>
    %61 = arith.subf %57, %60 : vector<16x16xf32>
    %62 = math.exp %61 : vector<16x16xf32>
    %cst_33 = arith.constant dense<0.000000e+00> : vector<16xf32>
    %63 = vector.multi_reduction <add>, %62, %cst_33 [0] : vector<16x16xf32> to vector<16xf32>
    %64 = vector.shape_cast %63 : vector<16xf32> to vector<1x16xf32>
    %cst_34 = arith.constant 9.99999968E-21 : f32
    %65 = vector.broadcast %cst_34 : f32 to vector<1x16xf32>
    %66 = arith.maximumf %64, %65 : vector<1x16xf32>
    %67 = tpu.reciprocal %66 : vector<1x16xf32> -> vector<1x16xf32>
    %cst_35 = arith.constant dense<0.000000e+00> : vector<16x8xf32>
    %68 = tpu.matmul %62, %45, %cst_35 {dimension_numbers = #tpu.dot_dimension_numbers<[0], [0], [1], [1], [0, 1, 1, 1], [], []>} : vector<16x16xf32>, vector<16x8xf32>, vector<16x8xf32> -> vector<16x8xf32>
    %69 = tpu.transpose %67, [1, 0] : vector<1x16xf32> -> vector<16x1xf32>
    %70 = vector.broadcast %69 : vector<16x1xf32> to vector<16x8xf32>
    %71 = arith.mulf %68, %70 : vector<16x8xf32>
    %c2 = arith.constant 2 : index
    %c0_36 = arith.constant 0 : index
    %c0_37 = arith.constant 0 : index
    %72 = vector.load %arg3[%c2, %c0_36, %c0_37] : memref<4x16x8xf32, #tpu.memory_space<vmem>>, vector<1x16x8xf32>
    %73 = vector.shape_cast %72 : vector<1x16x8xf32> to vector<16x8xf32>
    %c2_38 = arith.constant 2 : index
    %c0_39 = arith.constant 0 : index
    %c0_40 = arith.constant 0 : index
    %74 = vector.load %arg4[%c2_38, %c0_39, %c0_40] : memref<4x2x16xf32, #tpu.memory_space<vmem>>, vector<1x2x16xf32>
    %75 = vector.shape_cast %74 : vector<1x2x16xf32> to vector<2x16xf32>
    %76 = vector.extract_strided_slice %75 {offsets = [0, 0], sizes = [1, 16], strides = [1, 1]} : vector<2x16xf32> to vector<1x16xf32>
    %77 = vector.extract_strided_slice %75 {offsets = [1, 0], sizes = [1, 16], strides = [1, 1]} : vector<2x16xf32> to vector<1x16xf32>
    %cst_41 = arith.constant dense<0.000000e+00> : vector<16x8xf32>
    %78 = tpu.matmul %0, %73, %cst_41 {dimension_numbers = #tpu.dot_dimension_numbers<[1], [0], [0], [1], [0, 0, 1, 1], [], []>} : vector<16x16xf32>, vector<16x8xf32>, vector<16x8xf32> -> vector<16x8xf32>
    %cst_42 = arith.constant dense<0.000000e+00> : vector<16x1xf32>
    %79 = tpu.matmul %0, %76, %cst_42 {dimension_numbers = #tpu.dot_dimension_numbers<[1], [1], [0], [0], [0, 0, 1, 0], [], []>} : vector<16x16xf32>, vector<1x16xf32>, vector<16x1xf32> -> vector<16x1xf32>
    %cst_43 = arith.constant dense<0.000000e+00> : vector<1x16xf32>
    %80 = tpu.matmul %77, %1, %cst_43 {dimension_numbers = #tpu.dot_dimension_numbers<[1], [1], [0], [0], [0, 0, 1, 0], [], []>} : vector<1x16xf32>, vector<16x16xf32>, vector<1x16xf32> -> vector<1x16xf32>
    %81 = vector.broadcast %79 : vector<16x1xf32> to vector<16x16xf32>
    %82 = vector.broadcast %80 : vector<1x16xf32> to vector<16x16xf32>
    %83 = arith.addf %81, %82 : vector<16x16xf32>
    %cst_44 = arith.constant 0.000000e+00 : f32
    %84 = vector.broadcast %cst_44 : f32 to vector<16x16xf32>
    %85 = arith.cmpf ogt, %83, %84 : vector<16x16xf32>
    %cst_45 = arith.constant 0.00999999977 : f32
    %86 = vector.broadcast %cst_45 : f32 to vector<16x16xf32>
    %87 = arith.mulf %86, %83 : vector<16x16xf32>
    %88 = arith.select %85, %83, %87 : vector<16x16xi1>, vector<16x16xf32>
    %cst_46 = arith.constant -1.000000e+30 : f32
    %89 = vector.broadcast %cst_46 : f32 to vector<16x16xf32>
    %90 = arith.select %5, %88, %89 : vector<16x16xi1>, vector<16x16xf32>
    %cst_47 = arith.constant dense<0xFF800000> : vector<16xf32>
    %91 = vector.multi_reduction <maximumf>, %90, %cst_47 [0] : vector<16x16xf32> to vector<16xf32>
    %92 = vector.shape_cast %91 : vector<16xf32> to vector<1x16xf32>
    %93 = vector.broadcast %92 : vector<1x16xf32> to vector<16x16xf32>
    %94 = arith.subf %90, %93 : vector<16x16xf32>
    %95 = math.exp %94 : vector<16x16xf32>
    %cst_48 = arith.constant dense<0.000000e+00> : vector<16xf32>
    %96 = vector.multi_reduction <add>, %95, %cst_48 [0] : vector<16x16xf32> to vector<16xf32>
    %97 = vector.shape_cast %96 : vector<16xf32> to vector<1x16xf32>
    %cst_49 = arith.constant 9.99999968E-21 : f32
    %98 = vector.broadcast %cst_49 : f32 to vector<1x16xf32>
    %99 = arith.maximumf %97, %98 : vector<1x16xf32>
    %100 = tpu.reciprocal %99 : vector<1x16xf32> -> vector<1x16xf32>
    %cst_50 = arith.constant dense<0.000000e+00> : vector<16x8xf32>
    %101 = tpu.matmul %95, %78, %cst_50 {dimension_numbers = #tpu.dot_dimension_numbers<[0], [0], [1], [1], [0, 1, 1, 1], [], []>} : vector<16x16xf32>, vector<16x8xf32>, vector<16x8xf32> -> vector<16x8xf32>
    %102 = tpu.transpose %100, [1, 0] : vector<1x16xf32> -> vector<16x1xf32>
    %103 = vector.broadcast %102 : vector<16x1xf32> to vector<16x8xf32>
    %104 = arith.mulf %101, %103 : vector<16x8xf32>
    %c3 = arith.constant 3 : index
    %c0_51 = arith.constant 0 : index
    %c0_52 = arith.constant 0 : index
    %105 = vector.load %arg3[%c3, %c0_51, %c0_52] : memref<4x16x8xf32, #tpu.memory_space<vmem>>, vector<1x16x8xf32>
    %106 = vector.shape_cast %105 : vector<1x16x8xf32> to vector<16x8xf32>
    %c3_53 = arith.constant 3 : index
    %c0_54 = arith.constant 0 : index
    %c0_55 = arith.constant 0 : index
    %107 = vector.load %arg4[%c3_53, %c0_54, %c0_55] : memref<4x2x16xf32, #tpu.memory_space<vmem>>, vector<1x2x16xf32>
    %108 = vector.shape_cast %107 : vector<1x2x16xf32> to vector<2x16xf32>
    %109 = vector.extract_strided_slice %108 {offsets = [0, 0], sizes = [1, 16], strides = [1, 1]} : vector<2x16xf32> to vector<1x16xf32>
    %110 = vector.extract_strided_slice %108 {offsets = [1, 0], sizes = [1, 16], strides = [1, 1]} : vector<2x16xf32> to vector<1x16xf32>
    %cst_56 = arith.constant dense<0.000000e+00> : vector<16x8xf32>
    %111 = tpu.matmul %0, %106, %cst_56 {dimension_numbers = #tpu.dot_dimension_numbers<[1], [0], [0], [1], [0, 0, 1, 1], [], []>} : vector<16x16xf32>, vector<16x8xf32>, vector<16x8xf32> -> vector<16x8xf32>
    %cst_57 = arith.constant dense<0.000000e+00> : vector<16x1xf32>
    %112 = tpu.matmul %0, %109, %cst_57 {dimension_numbers = #tpu.dot_dimension_numbers<[1], [1], [0], [0], [0, 0, 1, 0], [], []>} : vector<16x16xf32>, vector<1x16xf32>, vector<16x1xf32> -> vector<16x1xf32>
    %cst_58 = arith.constant dense<0.000000e+00> : vector<1x16xf32>
    %113 = tpu.matmul %110, %1, %cst_58 {dimension_numbers = #tpu.dot_dimension_numbers<[1], [1], [0], [0], [0, 0, 1, 0], [], []>} : vector<1x16xf32>, vector<16x16xf32>, vector<1x16xf32> -> vector<1x16xf32>
    %114 = vector.broadcast %112 : vector<16x1xf32> to vector<16x16xf32>
    %115 = vector.broadcast %113 : vector<1x16xf32> to vector<16x16xf32>
    %116 = arith.addf %114, %115 : vector<16x16xf32>
    %cst_59 = arith.constant 0.000000e+00 : f32
    %117 = vector.broadcast %cst_59 : f32 to vector<16x16xf32>
    %118 = arith.cmpf ogt, %116, %117 : vector<16x16xf32>
    %cst_60 = arith.constant 0.00999999977 : f32
    %119 = vector.broadcast %cst_60 : f32 to vector<16x16xf32>
    %120 = arith.mulf %119, %116 : vector<16x16xf32>
    %121 = arith.select %118, %116, %120 : vector<16x16xi1>, vector<16x16xf32>
    %cst_61 = arith.constant -1.000000e+30 : f32
    %122 = vector.broadcast %cst_61 : f32 to vector<16x16xf32>
    %123 = arith.select %5, %121, %122 : vector<16x16xi1>, vector<16x16xf32>
    %cst_62 = arith.constant dense<0xFF800000> : vector<16xf32>
    %124 = vector.multi_reduction <maximumf>, %123, %cst_62 [0] : vector<16x16xf32> to vector<16xf32>
    %125 = vector.shape_cast %124 : vector<16xf32> to vector<1x16xf32>
    %126 = vector.broadcast %125 : vector<1x16xf32> to vector<16x16xf32>
    %127 = arith.subf %123, %126 : vector<16x16xf32>
    %128 = math.exp %127 : vector<16x16xf32>
    %cst_63 = arith.constant dense<0.000000e+00> : vector<16xf32>
    %129 = vector.multi_reduction <add>, %128, %cst_63 [0] : vector<16x16xf32> to vector<16xf32>
    %130 = vector.shape_cast %129 : vector<16xf32> to vector<1x16xf32>
    %cst_64 = arith.constant 9.99999968E-21 : f32
    %131 = vector.broadcast %cst_64 : f32 to vector<1x16xf32>
    %132 = arith.maximumf %130, %131 : vector<1x16xf32>
    %133 = tpu.reciprocal %132 : vector<1x16xf32> -> vector<1x16xf32>
    %cst_65 = arith.constant dense<0.000000e+00> : vector<16x8xf32>
    %134 = tpu.matmul %128, %111, %cst_65 {dimension_numbers = #tpu.dot_dimension_numbers<[0], [0], [1], [1], [0, 1, 1, 1], [], []>} : vector<16x16xf32>, vector<16x8xf32>, vector<16x8xf32> -> vector<16x8xf32>
    %135 = tpu.transpose %133, [1, 0] : vector<1x16xf32> -> vector<16x1xf32>
    %136 = vector.broadcast %135 : vector<16x1xf32> to vector<16x8xf32>
    %137 = arith.mulf %134, %136 : vector<16x8xf32>
    %138 = tpu.concatenate %38, %71, %104, %137 in 1 : vector<16x8xf32>, vector<16x8xf32>, vector<16x8xf32>, vector<16x8xf32> -> vector<16x32xf32>
    %c0_66 = arith.constant 0 : index
    %c0_67 = arith.constant 0 : index
    %139 = vector.load %arg6[%c0_66, %c0_67] : memref<16x32xf32, #tpu.memory_space<vmem>>, vector<16x32xf32>
    tpu.vector_store %arg6[%c0_66, %c0_67], %138 {strides = array<i32>} : memref<16x32xf32, #tpu.memory_space<vmem>>, vector<16x32xf32>,
    return
  }
  func.func @transform_0(%arg0: i32) -> (i32, i32) {
    %c0_i32 = arith.constant 0 : i32
    %c0_i32_0 = arith.constant 0 : i32
    %c0_i32_1 = arith.constant 0 : i32
    return %c0_i32, %c0_i32_0 : i32, i32
  }
  func.func @transform_1(%arg0: i32) -> (i32, i32) {
    %c0_i32 = arith.constant 0 : i32
    %c0_i32_0 = arith.constant 0 : i32
    return %arg0, %c0_i32 : i32, i32
  }
  func.func @transform_2(%arg0: i32) -> (i32, i32, i32) {
    %c0_i32 = arith.constant 0 : i32
    %c0_i32_0 = arith.constant 0 : i32
    %c0_i32_1 = arith.constant 0 : i32
    %c0_i32_2 = arith.constant 0 : i32
    return %c0_i32, %c0_i32_0, %c0_i32_1 : i32, i32, i32
  }
  func.func @transform_3(%arg0: i32) -> (i32, i32, i32) {
    %c0_i32 = arith.constant 0 : i32
    %c0_i32_0 = arith.constant 0 : i32
    %c0_i32_1 = arith.constant 0 : i32
    %c0_i32_2 = arith.constant 0 : i32
    return %c0_i32, %c0_i32_0, %c0_i32_1 : i32, i32, i32
  }
  func.func @transform_4(%arg0: i32) -> (i32, i32) {
    %c0_i32 = arith.constant 0 : i32
    %c0_i32_0 = arith.constant 0 : i32
    return %c0_i32, %arg0 : i32, i32
  }
  func.func @transform_5(%arg0: i32) -> (i32, i32) {
    %c0_i32 = arith.constant 0 : i32
    %c0_i32_0 = arith.constant 0 : i32
    return %arg0, %c0_i32 : i32, i32
  }
}

</mosaic_0001>

<bundles_post_ra>
// kernel: tpu_custom_call.1
= control target key start
LH: loop header
LB: loop body
LE: loop exit
PB: predicated region body
PF: predicated region fallthrough
CT: control target
= control target key end

     0   :  { %vm36_vm0 = vcmask 130048   ;;  %v118_v1 = vlaneseq  ;;  %v1772_v2 = vmov 0.0   ;;  %vm1773_vm1 = vmmov 0   ;;  %s1995_s0 = inlined_call_operand.vmem [shape: f32[16,16], index: 0, kind: input, shape index: {}]   ;;  %s1996_s1 = inlined_call_operand.vmem [shape: f32[16,16], index: 1, kind: input, shape index: {}]   ;;  %s1997_s2 = inlined_call_operand.vmem [shape: f32[4,16,8], index: 2, kind: input, shape index: {}]   ;;  %s1998_s3 = inlined_call_operand.vmem [shape: f32[4,2,16], index: 3, kind: input, shape index: {}]   ;;  %s1999_s4 = inlined_call_operand.vmem [shape: s8[16,16], index: 4, kind: input, shape index: {}]   ;;  %s2000_s5 = inlined_call_operand.hbm [shape: f32[16,32], index: 5, kind: output, shape index: {}]  }
   0x1   :  { %v24_v0 = vld [vmem:[%s1996_s1 + $0x8] sm:$0xff]  ;;  %1639 = vmatprep.subr.mxu1 %v1772_v2  ;;  %1643 = vmatprep.mubr.msk.f32.mxu1 %vm1773_vm1, %v1772_v2  ;;  %v35_v4 = vld [vmem:[%s1998_s3] sm:$0x3] }
   0x2   :  { %v34_v3 = vld [vmem:[%s1997_s2 + $0x8] sm:$0xff]  ;;  %1640 = vmatpush3.xpose.msk.msra.mxu1 %vm36_vm0, %v24_v0  ;;  %v119_v5 = vshrl.u32 %v118_v1, 7  ;;  %v33_v6 = vld [vmem:[%s1997_s2] sm:$0xff] }
   0x3   :  { %1632 = vmatprep.subr.mxu0 %v34_v3 }
   0x4   :  { %10 = vsyncpa [#allocation3], 0  ;;  %1641 = vmatprep.subr.mxu1 %v1772_v2  ;;  %v23_v7 = vld [vmem:[%s1996_s1] sm:$0xff]  ;;  %1633 = vmatpush3.msra.mxu0 %v34_v3  ;;  %v1832_v9 = vsub.s32 0, %v119_v5  ;;  %v131_v10 = vrot.slane %v35_v4, 1  ;;  %v1839_v11 = vld [vmem:[%s1995_s0 + $0x8] sm:$0xff] }
   0x5   :  { %v1830_v8 = vld [vmem:[%s1995_s0] sm:$0xff]  ;;  %1634 = vmatprep.subr.mxu0 %v33_v6  ;;  %v1555_v61 = vld [vmem:[%s1997_s2 + $0x18] sm:$0xff]  ;;  %s1776_s23 = smov 8   ;;  %s1777_s24 = smov 24   ;;  %vm1520_vm12 = vcmask 64512   ;;  %vm1525_vm13 = vcmask 195584  }
   0x6   :  { %1636 = vmatprep.mubr.msk.f32.mxu0 %vm36_vm0, %v1830_v8  ;;  %1635 = vmatpush3.msra.mxu0 %v33_v6  ;;  %v121_v12 = vrot.slane %v35_v4, %v1832_v9  ;;  %v1556_v17 = vld [vmem:[%s1998_s3 + $0x2] sm:$0x3]  ;;  %v1863_v19 = vld [vmem:[%s1998_s3 + $0x4] sm:$0x3]  ;;  %vm1528_vm14 = vcmask 261120   ;;  %s1778_s25 = smov [#allocation2]  }
   0x7   :  { %1642 = vmatpush3.xpose.msk.msra.mxu1 %vm36_vm0, %v23_v7  ;;  %1637 = vmatmul.mubr.msk.f32.vlgmr.msra.gmra.mxu0 %vm36_vm0, %v1839_v11  ;;  %v500_v18 = vrot.slane %v1556_v17, 1  ;;  %v863_v20 = vrot.slane %v1863_v19, 1  ;;  %v490_v21 = vrot.slane %v1556_v17, %v1832_v9  ;;  %v1585_v24 = vld [vmem:[%s1999_s4] sm:$0xf]   ;;  %v1554_v17 = vld [vmem:[%s1997_s2 + $0x10] sm:$0xff]  ;;  %s1536_s26 = sshll.u32 %s1778_s25, 4  ;;  %s1537_s26 = int_to_ptr.vmem [resolvable:$true] %s1536_s26 }
   0x8   :  { %1660 = vmatprep.subr.mxu1 %v1772_v2  ;;  %v122_v13 = vmul.f32 %v121_v12, %v1830_v8  ;;  %v123_v14 = vmul.f32 %v121_v12, %v1839_v11  ;;  %v1586_v26 = vunpack.c.0.s8 %v1585_v24  ;;  %v1587_v27 = vunpack.c.1.s8 %v1585_v24  ;;  %s1750_s27 = scalar_lea.vmem %s1537_s26, 256  ;;  %p1755_p1 = scmp.lt.s32.totalorder %s1537_s26, %s1537_s26 }
   0x9   :  { %v491_v22 = vmul.f32 %v490_v21, %v1830_v8  ;;  %v492_v63 = vmul.f32 %v490_v21, %v1839_v11  ;;  %p1751_p0 = scmp.ne.s32.totalorder %s1537_s26, %s1750_s27  ;;  %p1756_p2 = scmp.lt.s32.totalorder %s1750_s27, %s1750_s27 }
   0xa   :  { %1644 = vmatmul.mubr.msk.f32.vlgmr.msra.gmra.mxu1 %vm36_vm0, %v131_v10  ;;  %v124_v15 = vsel %vm36_vm0, %v122_v13, 0.0  ;;  %v127_v16 = vsel %vm36_vm0, %v123_v14, 0.0  ;;  %v1876_v28 = vcvt.s32.f32 %v1586_v26  ;;  %v1878_v30 = vcvt.s32.f32 %v1587_v27  ;;  %v1907_v13 = vld [vmem:[%s1998_s3 + $0x6] sm:$0x3] }
   0xb   :  { %1661 = vmatpush3.xpose.msk.msra.mxu1 %vm36_vm0, %v24_v0  ;;  %1664 = vmatprep.mubr.msk.f32.mxu1 %vm1773_vm1, %v1772_v2  ;;  %v493_v23 = vsel %vm36_vm0, %v491_v22, 0.0  ;;  %v496_v1 = vsel %vm36_vm0, %v492_v63, 0.0  ;;  %v1226_v14 = vrot.slane %v1907_v13, 1  ;;  %p1757_p3 = por %p1756_p2, %p1755_p1 }
   0xc   :  { %125 = vadd.xlane.f32.xlu0 %v124_v15  ;;  %1662 = vmatprep.subr.mxu1 %v1772_v2  ;;  %vm31_vm2 = vcmp.gt.f32.partialorder %v1876_v28, 0.0  ;;  %vm32_vm3 = vcmp.gt.f32.partialorder %v1878_v30, 0.0 }
   0xd   :  { %p1758_p4 = pnand %p1757_p3, %p1751_p0 }
   0xf   :  { %1663 = vmatpush3.xpose.msk.msra.mxu1 %vm36_vm0, %v23_v7 }
  0x10   :  { %128 = vadd.xlane.f32.xlu0 %v127_v16  ;;  %1681 = vmatprep.subr.mxu1 %v1772_v2 }
  0x12   :  { %1665 = vmatmul.mubr.msk.f32.vlgmr.msra.gmra.mxu1 %vm36_vm0, %v500_v18 }
  0x13   :  { %1682 = vmatpush3.xpose.msk.msra.mxu1 %vm36_vm0, %v24_v0  ;;  %1685 = vmatprep.mubr.msk.f32.mxu1 %vm1773_vm1, %v1772_v2 }
  0x14   :  { %1683 = vmatprep.subr.mxu1 %v1772_v2  ;;  %494 = vadd.xlane.f32.xlu0 %v493_v23 }
  0x17   :  { %1684 = vmatpush3.xpose.msk.msra.mxu1 %vm36_vm0, %v23_v7 }
  0x18   :  { %1702 = vmatprep.subr.mxu1 %v1772_v2 }
  0x1a   :  { %1686 = vmatmul.mubr.msk.f32.vlgmr.msra.gmra.mxu1 %vm36_vm0, %v863_v20 }
  0x1b   :  { %1703 = vmatpush3.xpose.msk.msra.mxu1 %vm36_vm0, %v24_v0  ;;  %1706 = vmatprep.mubr.msk.f32.mxu1 %vm1773_vm1, %v1772_v2  ;;  %v853_v0 = vrot.slane %v1863_v19, %v1832_v9 }
  0x1c   :  { %1704 = vmatprep.subr.mxu1 %v1772_v2 }
  0x1d   :  { %v854_v2 = vmul.f32 %v853_v0, %v1830_v8  ;;  %v855_v4 = vmul.f32 %v853_v0, %v1839_v11 }
  0x1f   :  { %1705 = vmatpush3.xpose.msk.msra.mxu1 %vm36_vm0, %v23_v7  ;;  %v856_v3 = vsel %vm36_vm0, %v854_v2, 0.0  ;;  %v859_v5 = vsel %vm36_vm0, %v855_v4, 0.0 }
  0x22   :  { %1707 = vmatmul.mubr.msk.f32.vlgmr.msra.gmra.mxu1 %vm36_vm0, %v1226_v14 }
  0x95   :  { %v126_v25 = vpop.xlane.xlu0 %125 }
  0x99   :  { %v129_v31 = vpop.xlane.xlu0 %128 }
  0x9d   :  { %v495_v19 = vpop.xlane.xlu0 %494 }
  0xc7   :  { %v1638_v55 = vpop.f32.mrf.mxu0 }
  0xc8   :  { %1646 = vmatprep.subr.mxu0 %v1638_v55 }
  0xc9   :  { %v109_v56 = vpop.f32.mrf.mxu0  ;;  %1647 = vmatpush3.msra.mxu0 %v1638_v55 }
  0xca   :  { %v206_v29 = vpop.f32.mrf.mxu1  ;;  %1648 = vmatprep.subr.mxu0 %v109_v56 }
  0xcb   :  { %v213_v32 = vrot.slane %v206_v29, %v1832_v9  ;;  %1649 = vmatpush3.msra.mxu0 %v109_v56 }
  0xcc   :  { %v1645_v33 = vpop.f32.mrf.mxu1  ;;  %1653 = vmatprep.subr.mxu0 %v1555_v61 }
  0xcd   :  { %v214_v34 = vadd.f32 %v213_v32, %v126_v25  ;;  %v215_v35 = vadd.f32 %v213_v32, %v129_v31 }
  0xcf   :  { %vm216_vm4 = vcmp.gt.f32.partialorder %v214_v34, 0.0  ;;  %v218_v36 = vmul.f32 0.01, %v214_v34  ;;  %vm217_vm5 = vcmp.gt.f32.partialorder %v215_v35, 0.0  ;;  %v219_v37 = vmul.f32 0.01, %v215_v35 }
  0xd1   :  { %v220_v38 = vsel %vm216_vm4, %v214_v34, %v218_v36  ;;  %v221_v39 = vsel %vm217_vm5, %v215_v35, %v219_v37 }
  0xd2   :  { %v222_v40 = vsel %vm31_vm2, %v220_v38, -1e+30  ;;  %v223_v41 = vsel %vm32_vm3, %v221_v39, -1e+30  ;;  %v569_v6 = vpop.f32.mrf.mxu1 }
  0xd3   :  { %v224_v42 = vsel %vm36_vm0, %v222_v40, -inf  ;;  %v225_v43 = vsel %vm36_vm0, %v223_v41, -inf  ;;  %v576_v18 = vrot.slane %v569_v6, %v1832_v9 }
  0xd4   :  { %v226_v44 = vmax.f32 %v224_v42, %v225_v43  ;;  %v1666_v7 = vpop.f32.mrf.mxu1 }
  0xd5   :  { %v577_v20 = vadd.f32 %v576_v18, %v495_v19 }
  0xd6   :  { %v227_v45 = vrot.slane %v226_v44, 4 }
  0xd7   :  { %v581_v21 = vmul.f32 0.01, %v577_v20  ;;  %vm579_vm6 = vcmp.gt.f32.partialorder %v577_v20, 0.0 }
  0xd8   :  { %v228_v46 = vmax.f32 %v226_v44, %v227_v45 }
  0xd9   :  { %v583_v23 = vsel %vm579_vm6, %v577_v20, %v581_v21 }
  0xda   :  { %v229_v47 = vrot.slane %v228_v46, 2  ;;  %v932_v10 = vpop.f32.mrf.mxu1  ;;  %v585_v27 = vsel %vm31_vm2, %v583_v23, -1e+30 }
  0xdb   :  { %v939_v25 = vrot.slane %v932_v10, %v1832_v9  ;;  %v587_v34 = vsel %vm36_vm0, %v585_v27, -inf }
  0xdc   :  { %v230_v48 = vmax.f32 %v228_v46, %v229_v47  ;;  %v1687_v12 = vpop.f32.mrf.mxu1 }
  0xde   :  { %v231_v49 = vrot.slane %v230_v48, 1 }
  0xe0   :  { %v232_v50 = vmax.f32 %v230_v48, %v231_v49 }
  0xe2   :  { %v233_v51 = vsub.f32 %v222_v40, %v232_v50  ;;  %v234_v52 = vsub.f32 %v223_v41, %v232_v50 }
  0xe4   :  { %v235_v53 = vmul.f32 1.442695, %v233_v51  ;;  %v237_v54 = vmul.f32 1.442695, %v234_v52 }
  0xe6   :  { %1726 = vpow2.f32 %v235_v53 }
  0xe7   :  { %1728 = vpow2.f32 %v237_v54 }
  0xf3   :  { %v1727_v57 = vpop.eup %1726 }
  0xf4   :  { %v1729_v58 = vpop.eup %1728  ;;  %v239_v59 = vsel %vm36_vm0, %v1727_v57, 0.0  ;;  %250 = vxpose.xlu1.b32.start [1/2] (short) (narrow) %v1727_v57, 16 }
  0xf5   :  { %v240_v60 = vsel %vm36_vm0, %v1729_v58, 0.0 }
  0xf6   :  { %v1894_v62 = vadd.f32 %v240_v60, %v239_v59 }
  0xf8   :  { %251 = vxpose.xlu1.b32.end [2/2] (short) (narrow) %v1729_v58, 16 }
 0x11f   :  { %497 = vadd.xlane.f32.xlu1 %v496_v1 }
 0x123   :  { %857 = vadd.xlane.f32.xlu1 %v856_v3 }
 0x127   :  { %860 = vadd.xlane.f32.xlu1 %v859_v5 }
 0x170   :  { %v266_v15 = vpop.trf.xlu1 }
 0x171   :  { %1650 = vmatprep.mubr.msk.f32.mxu0 %vm36_vm0, %v266_v15 }
 0x174   :  { %v267_v16 = vpop.trf.xlu1 }
 0x175   :  { %1651 = vmatmul.mubr.msk.f32.vlgmr.msra.gmra.mxu0 %vm36_vm0, %v267_v16 }
 0x176   :  { %1654 = vmatpush3.msra.mxu0 %v1555_v61  ;;  %1657 = vmatprep.mubr.msk.f32.mxu0 %vm36_vm0, %v1830_v8 }
 0x177   :  { %1655 = vmatprep.subr.mxu0 %v1554_v17 }
 0x178   :  { %1656 = vmatpush3.msra.mxu0 %v1554_v17 }
 0x179   :  { %1658 = vmatmul.mubr.msk.f32.vlgmr.msra.gmra.mxu0 %vm36_vm0, %v1839_v11 }
 0x1a8   :  { %v498_v22 = vpop.xlane.xlu1 %497 }
 0x1a9   :  { %v578_v24 = vadd.f32 %v576_v18, %v498_v22 }
 0x1ab   :  { %vm580_vm7 = vcmp.gt.f32.partialorder %v578_v24, 0.0  ;;  %v582_v26 = vmul.f32 0.01, %v578_v24 }
 0x1ac   :  { %v858_v29 = vpop.xlane.xlu1 %857 }
 0x1ad   :  { %v584_v31 = vsel %vm580_vm7, %v578_v24, %v582_v26  ;;  %v940_v32 = vadd.f32 %v939_v25, %v858_v29  ;;  %v1216_v24 = vrot.slane %v1907_v13, %v1832_v9 }
 0x1ae   :  { %v586_v33 = vsel %vm32_vm3, %v584_v31, -1e+30 }
 0x1af   :  { %v588_v35 = vsel %vm36_vm0, %v586_v33, -inf  ;;  %vm942_vm8 = vcmp.gt.f32.partialorder %v940_v32, 0.0  ;;  %v944_v36 = vmul.f32 0.01, %v940_v32 }
 0x1b0   :  { %v589_v37 = vmax.f32 %v587_v34, %v588_v35  ;;  %v861_v38 = vpop.xlane.xlu1 %860 }
 0x1b1   :  { %v946_v39 = vsel %vm942_vm8, %v940_v32, %v944_v36  ;;  %v941_v40 = vadd.f32 %v939_v25, %v861_v38  ;;  %v1217_v25 = vmul.f32 %v1216_v24, %v1830_v8 }
 0x1b2   :  { %v590_v41 = vrot.slane %v589_v37, 4  ;;  %v948_v42 = vsel %vm31_vm2, %v946_v39, -1e+30  ;;  %v1295_v39 = vpop.f32.mrf.mxu1 }
 0x1b3   :  { %vm943_vm9 = vcmp.gt.f32.partialorder %v941_v40, 0.0  ;;  %v945_v43 = vmul.f32 0.01, %v941_v40  ;;  %v950_v45 = vsel %vm36_vm0, %v948_v42, -inf  ;;  %v1219_v26 = vsel %vm36_vm0, %v1217_v25, 0.0 }
 0x1b4   :  { %v591_v44 = vmax.f32 %v589_v37, %v590_v41  ;;  %v1708_v41 = vpop.f32.mrf.mxu1 }
 0x1b5   :  { %v947_v46 = vsel %vm943_vm9, %v941_v40, %v945_v43 }
 0x1b6   :  { %v592_v47 = vrot.slane %v591_v44, 2  ;;  %v949_v48 = vsel %vm32_vm3, %v947_v46, -1e+30 }
 0x1b7   :  { %v951_v49 = vsel %vm36_vm0, %v949_v48, -inf }
 0x1b8   :  { %v593_v50 = vmax.f32 %v591_v44, %v592_v47  ;;  %v952_v51 = vmax.f32 %v950_v45, %v951_v49  ;;  %v1565_v47 = vld [vmem:[%s1997_s2 + $0x28] sm:$0xff] }
 0x1ba   :  { %v594_v52 = vrot.slane %v593_v50, 1  ;;  %v953_v53 = vrot.slane %v952_v51, 4 }
 0x1bc   :  { %v595_v54 = vmax.f32 %v593_v50, %v594_v52  ;;  %v954_v55 = vmax.f32 %v952_v51, %v953_v53  ;;  %v1564_v50 = vld [vmem:[%s1997_s2 + $0x20] sm:$0xff]  ;;  %v1302_v52 = vrot.slane %v1295_v39, %v1832_v9  ;;  %v1574_v39 = vld [vmem:[%s1997_s2 + $0x30] sm:$0xff] }
 0x1be   :  { %v596_v56 = vsub.f32 %v585_v27, %v595_v54  ;;  %v597_v57 = vsub.f32 %v586_v33, %v595_v54  ;;  %v955_v58 = vrot.slane %v954_v55, 2  ;;  %v1218_v27 = vmul.f32 %v1216_v24, %v1839_v11 }
 0x1c0   :  { %v598_v59 = vmul.f32 1.442695, %v596_v56  ;;  %v600_v60 = vmul.f32 1.442695, %v597_v57  ;;  %v956_v61 = vmax.f32 %v954_v55, %v955_v58  ;;  %v1222_v33 = vsel %vm36_vm0, %v1218_v27, 0.0 }
 0x1c2   :  { %1730 = vpow2.f32 %v598_v59  ;;  %v957_v63 = vrot.slane %v956_v61, 1 }
 0x1c3   :  { %1732 = vpow2.f32 %v600_v60 }
 0x1c4   :  { %v958_v0 = vmax.f32 %v956_v61, %v957_v63 }
 0x1c6   :  { %v959_v1 = vsub.f32 %v948_v42, %v958_v0  ;;  %v960_v2 = vsub.f32 %v949_v48, %v958_v0 }
 0x1c8   :  { %v961_v3 = vmul.f32 1.442695, %v959_v1  ;;  %v963_v4 = vmul.f32 1.442695, %v960_v2 }
 0x1ca   :  { %1734 = vpow2.f32 %v961_v3 }
 0x1cb   :  { %1736 = vpow2.f32 %v963_v4 }
 0x1cf   :  { %v1731_v5 = vpop.eup %1730 }
 0x1d0   :  { %v1733_v6 = vpop.eup %1732  ;;  %613 = vxpose.xlu0.b32.start [1/2] (short) (narrow) %v1731_v5, 16  ;;  %v602_v7 = vsel %vm36_vm0, %v1731_v5, 0.0 }
 0x1d1   :  { %v603_v10 = vsel %vm36_vm0, %v1733_v6, 0.0 }
 0x1d2   :  { %v604_v12 = vadd.f32 %v603_v10, %v602_v7 }
 0x1d4   :  { %614 = vxpose.xlu0.b32.end [2/2] (short) (narrow) %v1733_v6, 16  ;;  %v605_v14 = vrot.slane %v604_v12, 4 }
 0x1d6   :  { %v606_v15 = vadd.f32 %v605_v14, %v604_v12 }
 0x1d7   :  { %v1735_v16 = vpop.eup %1734 }
 0x1d8   :  { %976 = vxpose.xlu1.b32.start [1/2] (short) (narrow) %v1735_v16, 16  ;;  %v607_v17 = vrot.slane %v606_v15, 2  ;;  %v1737_v18 = vpop.eup %1736  ;;  %v965_v29 = vsel %vm36_vm0, %v1735_v16, 0.0 }
 0x1d9   :  { %v966_v31 = vsel %vm36_vm0, %v1737_v18, 0.0 }
 0x1da   :  { %v608_v19 = vadd.f32 %v607_v17, %v606_v15  ;;  %v967_v32 = vadd.f32 %v966_v31, %v965_v29 }
 0x1dc   :  { %977 = vxpose.xlu1.b32.end [2/2] (short) (narrow) %v1737_v18, 16  ;;  %v609_v20 = vrot.slane %v608_v19, 1  ;;  %v968_v34 = vrot.slane %v967_v32, 4 }
 0x1de   :  { %v610_v21 = vadd.f32 %v609_v20, %v608_v19  ;;  %v969_v35 = vadd.f32 %v968_v34, %v967_v32 }
 0x1e0   :  { %v611_v22 = vmax.f32 %v610_v21, 1e-20  ;;  %v970_v36 = vrot.slane %v969_v35, 2 }
 0x1e2   :  { %1738 = vrcp.f32 %v611_v22  ;;  %v971_v37 = vadd.f32 %v970_v36, %v969_v35 }
 0x1e4   :  { %v972_v13 = vrot.slane %v971_v37, 1 }
 0x1e6   :  { %v973_v38 = vadd.f32 %v972_v13, %v971_v37 }
 0x1e8   :  { %v974_v40 = vmax.f32 %v973_v38, 1e-20  ;;  %v1575_v38 = vld [vmem:[%s1997_s2 + $0x38] sm:$0xff]  ;;  %s1775_s2 = smov 16  }
 0x1ea   :  { %1740 = vrcp.f32 %v974_v40 }
 0x1ef   :  { %v1739_v23 = vpop.eup %1738 }
 0x1f0   :  { %726 = vxpose.xlu1.b32.start.end [1/1] (short) (narrow) %v1739_v23, 16 }
 0x1f7   :  { %v1741_v42 = vpop.eup %1740 }
 0x1f8   :  { %1089 = vxpose.xlu1.b32.start.end [1/1] (short) (narrow) %v1741_v42, 16  ;;  %v242_v42 = vrot.slane %v1894_v62, 4 }
 0x201   :  { %1220 = vadd.xlane.f32.xlu0 %v1219_v26 }
 0x205   :  { %1223 = vadd.xlane.f32.xlu0 %v1222_v33  ;;  %v1774_v33 = vmov 0  }
 0x235   :  { %v1944_v43 = vpop.f32.mrf.mxu0 }
 0x237   :  { %v1946_v44 = vpop.f32.mrf.mxu0 }
 0x239   :  { %v1659_v45 = vpop.f32.mrf.mxu0 }
 0x23a   :  { %1667 = vmatprep.subr.mxu0 %v1659_v45 }
 0x23b   :  { %v478_v46 = vpop.f32.mrf.mxu0  ;;  %1668 = vmatpush3.msra.mxu0 %v1659_v45 }
 0x23c   :  { %1669 = vmatprep.subr.mxu0 %v478_v46 }
 0x23d   :  { %1670 = vmatpush3.msra.mxu0 %v478_v46  ;;  %v243_v46 = vadd.f32 %v242_v42, %v1894_v62 }
 0x23e   :  { %1674 = vmatprep.subr.mxu0 %v1565_v47 }
 0x24c   :  { %v629_v48 = vpop.trf.xlu0 }
 0x24d   :  { %1671 = vmatprep.mubr.msk.f32.mxu0 %vm36_vm0, %v629_v48 }
 0x250   :  { %v630_v49 = vpop.trf.xlu0 }
 0x251   :  { %1672 = vmatmul.mubr.msk.f32.vlgmr.msra.gmra.mxu0 %vm36_vm0, %v630_v49 }
 0x252   :  { %1675 = vmatpush3.msra.mxu0 %v1565_v47  ;;  %1678 = vmatprep.mubr.msk.f32.mxu0 %vm36_vm0, %v1830_v8  ;;  %v244_v47 = vrot.slane %v243_v46, 2 }
 0x253   :  { %1676 = vmatprep.subr.mxu0 %v1564_v50 }
 0x254   :  { %1677 = vmatpush3.msra.mxu0 %v1564_v50  ;;  %v992_v51 = vpop.trf.xlu1  ;;  %v245_v48 = vadd.f32 %v244_v47, %v243_v46 }
 0x255   :  { %1679 = vmatmul.mubr.msk.f32.vlgmr.msra.gmra.mxu0 %vm36_vm0, %v1839_v11 }
 0x256   :  { %1692 = vmatprep.mubr.msk.f32.mxu0 %vm36_vm0, %v992_v51  ;;  %v246_v49 = vrot.slane %v245_v48, 1 }
 0x258   :  { %v993_v26 = vpop.trf.xlu1 }
 0x26c   :  { %v742_v29 = vpop.trf.xlu1 }
 0x270   :  { %v743_v31 = vpop.trf.xlu1 }
 0x274   :  { %v1105_v32 = vpop.trf.xlu1 }
 0x278   :  { %v1106_v34 = vpop.trf.xlu1 }
 0x28a   :  { %v1221_v53 = vpop.xlane.xlu0 %1220 }
 0x28b   :  { %v1303_v54 = vadd.f32 %v1302_v52, %v1221_v53 }
 0x28d   :  { %vm1305_vm10 = vcmp.gt.f32.partialorder %v1303_v54, 0.0  ;;  %v1307_v55 = vmul.f32 0.01, %v1303_v54 }
 0x28e   :  { %v1224_v56 = vpop.xlane.xlu0 %1223 }
 0x28f   :  { %v1309_v57 = vsel %vm1305_vm10, %v1303_v54, %v1307_v55  ;;  %v1304_v58 = vadd.f32 %v1302_v52, %v1224_v56 }
 0x290   :  { %v1311_v59 = vsel %vm31_vm2, %v1309_v57, -1e+30 }
 0x291   :  { %vm1306_vm11 = vcmp.gt.f32.partialorder %v1304_v58, 0.0  ;;  %v1308_v60 = vmul.f32 0.01, %v1304_v58  ;;  %v1313_v61 = vsel %vm36_vm0, %v1311_v59, -inf }
 0x293   :  { %v1310_v63 = vsel %vm1306_vm11, %v1304_v58, %v1308_v60 }
 0x294   :  { %v1312_v0 = vsel %vm32_vm3, %v1310_v63, -1e+30 }
 0x295   :  { %v1314_v9 = vsel %vm36_vm0, %v1312_v0, -inf }
 0x296   :  { %v1315_v1 = vmax.f32 %v1313_v61, %v1314_v9 }
 0x298   :  { %v1316_v2 = vrot.slane %v1315_v1, 4 }
 0x29a   :  { %v1317_v3 = vmax.f32 %v1315_v1, %v1316_v2 }
 0x29c   :  { %v1318_v4 = vrot.slane %v1317_v3, 2 }
 0x29e   :  { %v1319_v5 = vmax.f32 %v1317_v3, %v1318_v4 }
 0x2a0   :  { %v1320_v6 = vrot.slane %v1319_v5, 1 }
 0x2a2   :  { %v1321_v7 = vmax.f32 %v1319_v5, %v1320_v6 }
 0x2a4   :  { %v1322_v10 = vsub.f32 %v1311_v59, %v1321_v7  ;;  %v1323_v28 = vsub.f32 %v1312_v0, %v1321_v7 }
 0x2a6   :  { %v1324_v12 = vmul.f32 1.442695, %v1322_v10  ;;  %v1326_v14 = vmul.f32 1.442695, %v1323_v28 }
 0x2a8   :  { %1742 = vpow2.f32 %v1324_v12 }
 0x2a9   :  { %1744 = vpow2.f32 %v1326_v14 }
 0x2b5   :  { %v1743_v15 = vpop.eup %1742 }
 0x2b6   :  { %v1745_v16 = vpop.eup %1744  ;;  %v1328_v30 = vsel %vm36_vm0, %v1743_v15, 0.0  ;;  %1339 = vxpose.xlu0.b32.start [1/2] (short) (narrow) %v1743_v15, 16 }
 0x2b7   :  { %v1329_v17 = vsel %vm36_vm0, %v1745_v16, 0.0 }
 0x2b8   :  { %v1330_v18 = vadd.f32 %v1329_v17, %v1328_v30 }
 0x2ba   :  { %v1331_v19 = vrot.slane %v1330_v18, 4  ;;  %1340 = vxpose.xlu0.b32.end [2/2] (short) (narrow) %v1745_v16, 16 }
 0x2bc   :  { %v1332_v20 = vadd.f32 %v1331_v19, %v1330_v18 }
 0x2be   :  { %v1333_v21 = vrot.slane %v1332_v20, 2 }
 0x2c0   :  { %v1334_v22 = vadd.f32 %v1333_v21, %v1332_v20 }
 0x2c2   :  { %v1335_v23 = vrot.slane %v1334_v22, 1 }
 0x2c4   :  { %v1336_v24 = vadd.f32 %v1335_v23, %v1334_v22 }
 0x2c6   :  { %v1337_v25 = vmax.f32 %v1336_v24, 1e-20 }
 0x2c8   :  { %1746 = vrcp.f32 %v1337_v25 }
 0x2d5   :  { %v1747_v27 = vpop.eup %1746 }
 0x2d6   :  { %1452 = vxpose.xlu1.b32.start.end [1/1] (short) (narrow) %v1747_v27, 16 }
 0x2e3   :  { %1725 = vset.pattern.permute.xlu0 %v1774_v33 }
 0x2e4   :  { %1123 = vperm.xlu0 %1725, %v1105_v32  }
 0x2f4   :  { %1724 = vset.pattern.permute.xlu1 %v1774_v33 }
 0x2f8   :  { %760 = vperm.xlu1 %1724, %v742_v29  }
 0x2fc   :  { %765 = vperm.xlu1 %1724, %v743_v31  }
 0x300   :  { %1128 = vperm.xlu1 %1724, %v1106_v34  }
 0x311   :  { %v1673_v35 = vpop.f32.mrf.mxu0 }
 0x313   :  { %v717_v36 = vpop.f32.mrf.mxu0 }
 0x315   :  { %v1680_v37 = vpop.f32.mrf.mxu0 }
 0x316   :  { %1688 = vmatprep.subr.mxu0 %v1680_v37 }
 0x317   :  { %v841_v13 = vpop.f32.mrf.mxu0  ;;  %1689 = vmatpush3.msra.mxu0 %v1680_v37 }
 0x318   :  { %1690 = vmatprep.subr.mxu0 %v841_v13 }
 0x319   :  { %1691 = vmatpush3.msra.mxu0 %v841_v13 }
 0x31a   :  { %1693 = vmatmul.mubr.msk.f32.vlgmr.msra.gmra.mxu0 %vm36_vm0, %v993_v26  ;;  %1695 = vmatprep.subr.mxu0 %v1575_v38 }
 0x31b   :  { %1696 = vmatpush3.msra.mxu0 %v1575_v38  ;;  %1699 = vmatprep.mubr.msk.f32.mxu0 %vm36_vm0, %v1830_v8  ;;  %v247_v8 = vadd.f32 %v246_v49, %v245_v48 }
 0x31c   :  { %1697 = vmatprep.subr.mxu0 %v1574_v39 }
 0x31d   :  { %1698 = vmatpush3.msra.mxu0 %v1574_v39  ;;  %v248_v50 = vmax.f32 %v247_v8, 1e-20 }
 0x31e   :  { %1700 = vmatmul.mubr.msk.f32.vlgmr.msra.gmra.mxu0 %vm36_vm0, %v1839_v11 }
 0x31f   :  { %1748 = vrcp.f32 %v248_v50 }
 0x32c   :  { %v1749_v51 = vpop.eup %1748 }
 0x332   :  { %v1355_v40 = vpop.trf.xlu0 }
 0x333   :  { %1713 = vmatprep.mubr.msk.f32.mxu0 %vm36_vm0, %v1355_v40 }
 0x336   :  { %v1356_v11 = vpop.trf.xlu0 }
 0x352   :  { %v1468_v41 = vpop.trf.xlu1 }
 0x353   :  { %1486 = vperm.xlu1 %1724, %v1468_v41  }
 0x356   :  { %v1469_v45 = vpop.trf.xlu1 }
 0x357   :  { %1491 = vperm.xlu1 %1724, %v1469_v45  }
 0x35f   :  { %v1124_v53 = vpop.permute.xlu0 %1123 }
 0x373   :  { %v761_v62 = vpop.permute.xlu1 %760 }
 0x374   :  { %v768_v1 = vmul.f32 %v761_v62, %v717_v36 }
 0x377   :  { %v766_v58 = vpop.permute.xlu1 %765 }
 0x378   :  { %v769_v9 = vmul.f32 %v1673_v35, %v766_v58 }
 0x37b   :  { %v1129_v59 = vpop.permute.xlu1 %1128 }
 0x380   :  { %363 = vxpose.xlu1.b32.start.end [1/1] (short) (narrow) %v1749_v51, 16 }
 0x3ce   :  { %v1487_v60 = vpop.permute.xlu1 %1486 }
 0x3d2   :  { %v1492_v61 = vpop.permute.xlu1 %1491 }
 0x3da   :  { %v1694_v52 = vpop.f32.mrf.mxu0 }
 0x3db   :  { %v1132_v2 = vmul.f32 %v1694_v52, %v1129_v59 }
 0x3dc   :  { %v1080_v54 = vpop.f32.mrf.mxu0 }
 0x3dd   :  { %v1131_v55 = vmul.f32 %v1124_v53, %v1080_v54 }
 0x3de   :  { %v1701_v56 = vpop.f32.mrf.mxu0 }
 0x3df   :  { %1709 = vmatprep.subr.mxu0 %v1701_v56  ;;  %1506 = vrot.lane.b32.xlu1 %v1131_v55, %s1775_s2 }
 0x3e0   :  { %v1204_v57 = vpop.f32.mrf.mxu0  ;;  %1710 = vmatpush3.msra.mxu0 %v1701_v56 }
 0x3e1   :  { %1711 = vmatprep.subr.mxu0 %v1204_v57 }
 0x3e2   :  { %1712 = vmatpush3.msra.mxu0 %v1204_v57 }
 0x3e3   :  { %1714 = vmatmul.mubr.msk.f32.vlgmr.msra.gmra.mxu0 %vm36_vm0, %v1356_v11 }
 0x3fc   :  { %v379_v63 = vpop.trf.xlu1 }
 0x3fd   :  { %397 = vperm.xlu0 %1725, %v379_v63  }
 0x400   :  { %v380_v0 = vpop.trf.xlu1 }
 0x401   :  { %402 = vperm.xlu0 %1725, %v380_v0  }
 0x405   :  { %1500 = vrot.lane.b32.xlu0 %v769_v9, %s1776_s23 }
 0x409   :  { %1498 = vrot.lane.b32.xlu0 %v768_v1, %s1776_s23 }
 0x40d   :  { %1508 = vrot.lane.b32.xlu0 %v1132_v2, %s1775_s2 }
 0x451   :  { %v1507_v30 = vpop.permute.xlu1 %1506 }
 0x478   :  { %v398_v7 = vpop.permute.xlu0 %397 }
 0x479   :  { %v405_v14 = vmul.f32 %v398_v7, %v1946_v44 }
 0x47c   :  { %v403_v10 = vpop.permute.xlu0 %402 }
 0x47d   :  { %v406_v19 = vmul.f32 %v1944_v43, %v403_v10 }
 0x480   :  { %v1501_v28 = vpop.permute.xlu0 %1500 }
 0x481   :  { %v1522_v21 = vsel %vm1520_vm12, %v406_v19, %v1501_v28 }
 0x484   :  { %v1499_v12 = vpop.permute.xlu0 %1498 }
 0x485   :  { %v1521_v16 = vsel %vm1520_vm12, %v405_v14, %v1499_v12 }
 0x486   :  { %v1523_v18 = vsel %vm36_vm0, %v1521_v16, %v1507_v30 }
 0x488   :  { %v1509_v15 = vpop.permute.xlu0 %1508 }
 0x489   :  { %v1524_v22 = vsel %vm36_vm0, %v1522_v21, %v1509_v15 }
 0x4a3   :  { %v1715_v3 = vpop.f32.mrf.mxu0 }
 0x4a4   :  { %v1495_v6 = vmul.f32 %v1715_v3, %v1492_v61 }
 0x4a5   :  { %v1443_v4 = vpop.f32.mrf.mxu0 }
 0x4a6   :  { %v1494_v5 = vmul.f32 %v1487_v60, %v1443_v4 }
 0x4a8   :  { %1514 = vrot.lane.b32.xlu0 %v1494_v5, %s1777_s24 }
 0x4ac   :  { %1516 = vrot.lane.b32.xlu0 %v1495_v6, %s1777_s24 }
 0x51a   :  { %v1515_v17 = vpop.permute.xlu0 %1514 }
 0x51b   :  { %v1526_v20 = vsel %vm1525_vm13, %v1523_v18, %v1515_v17 }
 0x51c   :  { %1529 = vst.msk [vmem:[#allocation2] sm:$0xff] %vm1528_vm14, %v1526_v20 }
 0x51e   :  { %v1517_v23 = vpop.permute.xlu0 %1516 }
 0x51f   :  { %v1527_v44 = vsel %vm1525_vm13, %v1524_v22, %v1517_v23 }
 0x520   :  { %1530 = vst.msk [vmem:[#allocation2 + $0x8] sm:$0xff] %vm1528_vm14, %v1527_v44 }
 0x521   :  { %1761 = shalt.err (!%p1758_p4)
}
 0x522   :  { %s1779_s28 = smov 128  }
 0x523   :  { %1542 = dma.vmem_to_hbm [thread:$0]  %s1537_s26, 256, %s2000_s5, [#allocation3], %s1779_s28, %s1779_s28, %s1776_s23  }
 0x524   :  { %1770 = dma.done.wait [#allocation3], 256  }
 0x525   :  { %1771 = vsyncadd [#allocation3], 4294967040 }
 0x526   :  { %1546 = vsyncpa [#allocation3], 1 }

</bundles_post_ra>
